<compile_context>
chip_gen: v5e
topology: v5e:2x2
jax: 0.10.0
libtpu: 0.0.40
codegen_flags: <defaults>
</compile_context>

<pallas_src>
import functools

import jax
import jax.numpy as jnp
from jax.experimental import pallas as pl
from jax.experimental.pallas import tpu as pltpu


def _round_up(n, m):
    return ((n + m - 1) // m) * m


def value_net_kernel(x_ref, w1_ref, b1_ref, w2_ref, b2_ref, w3_ref, b3_ref,
                     out_ref, *, lane_dense_out):
    """One batch tile of the 3-layer MLP.

    x_ref:  (TB, S)  compute dtype     w1_ref: (S, H) compute dtype  b1: (1, H) f32
    w2_ref: (H, H)   compute dtype     b2: (1, H) f32
    w3_ref: (1, H)   f32               b3: (1, 1) f32
    out_ref: (1, 1, TB) f32 if lane_dense_out else (TB, 1) f32
    """
    # fc1 + ReLU: MXU matmul, f32 accumulation; bias/ReLU in f32 (v5e-safe VPU).
    h = jnp.dot(x_ref[...], w1_ref[...], preferred_element_type=jnp.float32)
    h = jnp.maximum(h + b1_ref[...], 0.0)

    # fc2 + ReLU.  Only the per-step activation needs a cast; the weights
    # already arrive in the compute dtype (cast once in the wrapper).
    h = jnp.dot(h.astype(w2_ref.dtype), w2_ref[...],
                preferred_element_type=jnp.float32)
    h = jnp.maximum(h + b2_ref[...], 0.0)

    # fc3: (TB, H) @ (H, 1) as a VPU multiply + cross-lane reduce (no MXU
    # push/drain for a single-lane result).
    v = jnp.sum(h * w3_ref[...], axis=-1, keepdims=True) + b3_ref[...]  # (TB, 1)

    if lane_dense_out:
        # Lane-dense (1, TB) row via a cheap XLU transpose -> unmasked vst.
        out_ref[0] = v.T.astype(out_ref.dtype)
    else:
        out_ref[...] = v.astype(out_ref.dtype)


def _build_call(*, S, H, eff_tile, num_tiles, lane_dense_out, weight_buffers,
                vmem_limit_bytes, flops, bytes_accessed):
    def const_spec(shape):
        idx = lambda i: (0,) * len(shape)
        if weight_buffers is None:
            return pl.BlockSpec(shape, idx)
        # Invariant operands: single pipeline buffer (never re-fetched).
        return pl.BlockSpec(shape, idx, pipeline_mode=pl.Buffered(weight_buffers))

    in_specs = [
        pl.BlockSpec((eff_tile, S), lambda i: (i, 0)),  # x: tiled over batch
        const_spec((S, H)),                             # w1 (VMEM-resident)
        const_spec((1, H)),                             # b1
        const_spec((H, H)),                             # w2
        const_spec((1, H)),                             # b2
        const_spec((1, H)),                             # w3 (stored (1, H))
        const_spec((1, 1)),                             # b3
    ]
    if lane_dense_out:
        out_shape = jax.ShapeDtypeStruct((num_tiles, 1, eff_tile), jnp.float32)
        out_specs = pl.BlockSpec((1, 1, eff_tile), lambda i: (i, 0, 0))
    else:
        out_shape = jax.ShapeDtypeStruct((num_tiles * eff_tile, 1), jnp.float32)
        out_specs = pl.BlockSpec((eff_tile, 1), lambda i: (i, 0))

    return pl.pallas_call(
        functools.partial(value_net_kernel, lane_dense_out=lane_dense_out),
        out_shape=out_shape,
        grid=(num_tiles,),
        in_specs=in_specs,
        out_specs=out_specs,
        compiler_params=pltpu.CompilerParams(
            # Batch tiles are independent -> shard across v7x's 2 TensorCores;
            # harmless on single-TC v5e/v6e.
            dimension_semantics=("parallel",),
            vmem_limit_bytes=vmem_limit_bytes),
        cost_estimate=pl.CostEstimate(
            flops=flops, transcendentals=0, bytes_accessed=bytes_accessed),
    )


# First (lane_dense_out, weight_buffers) config this Pallas build accepts,
# keyed by problem signature, so we only probe once.
_BEST_CONFIG = {}


def value_net_forward(x, params, *, tile_b=1024, compute_dtype=jnp.bfloat16):
    """Fused ValueNet forward.  x: (B, state_dim) -> (B, 1) f32."""
    w1, b1, w2, b2, w3, b3 = params
    B, S = x.shape
    H = w1.shape[1]
    compute_dtype = jnp.dtype(compute_dtype)
    c_item = compute_dtype.itemsize

    # Cast the MXU operands once in the wrapper (no per-grid-step re-cast in
    # the kernel).  For repeated calls, store params in compute_dtype upfront.
    x = x.astype(compute_dtype)
    w1 = w1.astype(compute_dtype)
    w2 = w2.astype(compute_dtype)
    b1, b2, w3, b3 = (p.astype(jnp.float32) for p in (b1, b2, w3, b3))

    # Batch tile: sublane multiple (16 for bf16 x, 8 for f32), capped at B.
    sub = 16 if c_item < 4 else 8
    eff_tile = min(_round_up(tile_b, sub), _round_up(B, sub))
    num_tiles = pl.cdiv(B, eff_tile)
    if num_tiles == 1 and B >= 2 * sub:
        # Guarantee >= 2 grid steps so "parallel" spans both v7x TensorCores.
        eff_tile = _round_up(pl.cdiv(B, 2), sub)
        num_tiles = pl.cdiv(B, eff_tile)

    # No full-array pad: the ragged tail tile reads OOB rows (garbage; rows are
    # independent) and the wrapper slices them off.  Only a tiny pad remains
    # when B is smaller than a single tile.
    rows = max(B, eff_tile)
    if rows > B:
        x = jnp.pad(x, ((0, rows - B), (0, 0)))

    weight_bytes = (S * H + H * H) * c_item + (3 * H + 1) * 4
    flops = 2 * num_tiles * eff_tile * (S * H + H * H + H)
    bytes_accessed = rows * S * c_item + weight_bytes + num_tiles * eff_tile * 4

    # Scoped-VMEM limit from the actual footprint (weights worst-case double
    # buffered + x/out double buffers + f32 activations) with headroom, clamped
    # to 64 MiB so the value is valid on every generation (v7x physical VMEM).
    est = (2 * weight_bytes
           + 2 * eff_tile * S * c_item
           + 2 * eff_tile * 4
           + eff_tile * H * (2 * 4 + c_item))
    vmem_limit_bytes = int(min(max(est * 5 // 4 + (2 << 20), 32 << 20), 64 << 20))

    common = dict(S=S, H=H, eff_tile=eff_tile, num_tiles=num_tiles,
                  vmem_limit_bytes=vmem_limit_bytes,
                  flops=flops, bytes_accessed=bytes_accessed)
    args = (x, w1, b1, w2, b2, w3, b3)
    key = (S, H, eff_tile, num_tiles, compute_dtype.name)

    if key in _BEST_CONFIG:
        lane_dense_out, weight_buffers = _BEST_CONFIG[key]
        out = _build_call(lane_dense_out=lane_dense_out,
                          weight_buffers=weight_buffers, **common)(*args)
    else:
        # Preferred configs first; fall back if this Pallas build rejects the
        # single-buffered invariant specs or the lane-dense store.
        configs = ((True, 1), (True, None), (False, 1), (False, None))
        last_err = None
        for lane_dense_out, weight_buffers in configs:
            try:
                out = _build_call(lane_dense_out=lane_dense_out,
                                  weight_buffers=weight_buffers, **common)(*args)
                jax.block_until_ready(out)
                _BEST_CONFIG[key] = (lane_dense_out, weight_buffers)
                break
            except Exception as err:  # fall through to the next config
                last_err = err
        else:
            raise last_err

    if lane_dense_out:
        out = out.reshape(num_tiles * eff_tile, 1)
    return out[:B]


def init_params(key, state_dim, hidden_dim):
    """Deterministic init mimicking PyTorch Linear's U(-1/sqrt(fan_in), ...)."""
    ks = jax.random.split(key, 6)

    def lin(kw, kb, fan_in, fan_out):
        bound = 1.0 / jnp.sqrt(fan_in)
        w = jax.random.uniform(kw, (fan_in, fan_out), jnp.float32, -bound, bound)
        b = jax.random.uniform(kb, (1, fan_out), jnp.float32, -bound, bound)
        return w, b

    w1, b1 = lin(ks[0], ks[1], state_dim, hidden_dim)
    w2, b2 = lin(ks[2], ks[3], hidden_dim, hidden_dim)
    # fc3 stored as (1, H) so the kernel can do a VPU multiply + lane reduce.
    w3t, b3 = lin(ks[4], ks[5], hidden_dim, 1)
    w3 = w3t.T  # (1, hidden_dim)
    return (w1, b1, w2, b2, w3, b3)


def reference_forward(x, params):
    w1, b1, w2, b2, w3, b3 = params
    h = jax.nn.relu(x @ w1 + b1)
    h = jax.nn.relu(h @ w2 + b2)
    return h @ w3.T + b3


if __name__ == "__main__":
    batch, state_dim, hidden_dim = 8, 16, 32

    key = jax.random.PRNGKey(0)
    k_x, k_p, k_x2, k_x3 = jax.random.split(key, 4)
    x = jax.random.normal(k_x, (batch, state_dim), jnp.float32)
    params = init_params(k_p, state_dim, hidden_dim)
    ref = reference_forward(x, params)

    # 1) f32 compute path: matches the pure-JAX reference tightly.
    out_f32 = value_net_forward(x, params, compute_dtype=jnp.float32)
    jax.block_until_ready(out_f32)
    assert out_f32.shape == (batch, 1)
    assert jnp.allclose(out_f32, ref, atol=1e-5, rtol=1e-5)

    # 2) Default bf16-MXU path (f32 accumulation): looser tolerance.
    out_bf16 = value_net_forward(x, params)
    jax.block_until_ready(out_bf16)
    assert out_bf16.shape == (batch, 1)
    assert jnp.allclose(out_bf16, ref, atol=5e-2, rtol=5e-2)

    # 3) Ragged multi-tile batch: exercises cdiv grid + OOB tail tile (no pad).
    x2 = jax.random.normal(k_x2, (40, state_dim), jnp.float32)
    out2 = value_net_forward(x2, params, tile_b=16)
    jax.block_until_ready(out2)
    assert out2.shape == (40, 1)
    assert jnp.allclose(out2, reference_forward(x2, params), atol=5e-2, rtol=5e-2)

    # 4) Batch that would be a single tile but is split in two so the grid can
    #    span both v7x TensorCores.
    x3 = jax.random.normal(k_x3, (48, state_dim), jnp.float32)
    out3 = value_net_forward(x3, params)
    jax.block_until_ready(out3)
    assert out3.shape == (48, 1)
    assert jnp.allclose(out3, reference_forward(x3, params), atol=5e-2, rtol=5e-2)

    print("KERNEL_OK")
</pallas_src>

<mosaic_0001>
module attributes {stable_mosaic.version = 11 : i64} {
  func.func @value_net_kernel(%arg0: i32, %arg1: memref<8x16xf32, #tpu.memory_space<vmem>>, %arg2: memref<16x32xf32, #tpu.memory_space<vmem>>, %arg3: memref<1x32xf32, #tpu.memory_space<vmem>>, %arg4: memref<32x32xf32, #tpu.memory_space<vmem>>, %arg5: memref<1x32xf32, #tpu.memory_space<vmem>>, %arg6: memref<1x32xf32, #tpu.memory_space<vmem>>, %arg7: memref<1x1xf32, #tpu.memory_space<vmem>>, %arg8: memref<1x1x8xf32, #tpu.memory_space<vmem>>) attributes {dimension_semantics = [#tpu.dimension_semantics<parallel>], iteration_bounds = array<i64: 1>, scalar_prefetch = 0 : i64, scratch_operands = 0 : i64, tpu.core_type = #tpu.core_type<tc>, window_params = [{transform_indices = @transform_0, window_bounds = array<i64: 8, 16>}, {pipeline_mode = #tpu.pipeline_mode<synchronous>, transform_indices = @transform_1, window_bounds = array<i64: 16, 32>}, {pipeline_mode = #tpu.pipeline_mode<synchronous>, transform_indices = @transform_2, window_bounds = array<i64: 1, 32>}, {pipeline_mode = #tpu.pipeline_mode<synchronous>, transform_indices = @transform_3, window_bounds = array<i64: 32, 32>}, {pipeline_mode = #tpu.pipeline_mode<synchronous>, transform_indices = @transform_4, window_bounds = array<i64: 1, 32>}, {pipeline_mode = #tpu.pipeline_mode<synchronous>, transform_indices = @transform_5, window_bounds = array<i64: 1, 32>}, {pipeline_mode = #tpu.pipeline_mode<synchronous>, transform_indices = @transform_6, window_bounds = array<i64: 1, 1>}, {transform_indices = @transform_7, window_bounds = array<i64: 1, 1, 8>}]} {
    %c0 = arith.constant 0 : index
    %c0_0 = arith.constant 0 : index
    %0 = vector.load %arg1[%c0, %c0_0] : memref<8x16xf32, #tpu.memory_space<vmem>>, vector<8x16xf32>
    %c0_1 = arith.constant 0 : index
    %c0_2 = arith.constant 0 : index
    %1 = vector.load %arg2[%c0_1, %c0_2] : memref<16x32xf32, #tpu.memory_space<vmem>>, vector<16x32xf32>
    %cst = arith.constant dense<0.000000e+00> : vector<8x32xf32>
    %2 = tpu.matmul %0, %1, %cst {dimension_numbers = #tpu.dot_dimension_numbers<[1], [0], [0], [1], [0, 0, 1, 1], [], []>} : vector<8x16xf32>, vector<16x32xf32>, vector<8x32xf32> -> vector<8x32xf32>
    %c0_3 = arith.constant 0 : index
    %c0_4 = arith.constant 0 : index
    %3 = vector.load %arg3[%c0_3, %c0_4] : memref<1x32xf32, #tpu.memory_space<vmem>>, vector<1x32xf32>
    %4 = vector.broadcast %3 : vector<1x32xf32> to vector<8x32xf32>
    %5 = arith.addf %2, %4 : vector<8x32xf32>
    %cst_5 = arith.constant 0.000000e+00 : f32
    %6 = vector.broadcast %cst_5 : f32 to vector<8x32xf32>
    %7 = arith.maximumf %5, %6 : vector<8x32xf32>
    %c0_6 = arith.constant 0 : index
    %c0_7 = arith.constant 0 : index
    %8 = vector.load %arg4[%c0_6, %c0_7] : memref<32x32xf32, #tpu.memory_space<vmem>>, vector<32x32xf32>
    %cst_8 = arith.constant dense<0.000000e+00> : vector<8x32xf32>
    %9 = tpu.matmul %7, %8, %cst_8 {dimension_numbers = #tpu.dot_dimension_numbers<[1], [0], [0], [1], [0, 0, 1, 1], [], []>} : vector<8x32xf32>, vector<32x32xf32>, vector<8x32xf32> -> vector<8x32xf32>
    %c0_9 = arith.constant 0 : index
    %c0_10 = arith.constant 0 : index
    %10 = vector.load %arg5[%c0_9, %c0_10] : memref<1x32xf32, #tpu.memory_space<vmem>>, vector<1x32xf32>
    %11 = vector.broadcast %10 : vector<1x32xf32> to vector<8x32xf32>
    %12 = arith.addf %9, %11 : vector<8x32xf32>
    %cst_11 = arith.constant 0.000000e+00 : f32
    %13 = vector.broadcast %cst_11 : f32 to vector<8x32xf32>
    %14 = arith.maximumf %12, %13 : vector<8x32xf32>
    %c0_12 = arith.constant 0 : index
    %c0_13 = arith.constant 0 : index
    %15 = vector.load %arg6[%c0_12, %c0_13] : memref<1x32xf32, #tpu.memory_space<vmem>>, vector<1x32xf32>
    %16 = vector.broadcast %15 : vector<1x32xf32> to vector<8x32xf32>
    %17 = arith.mulf %14, %16 : vector<8x32xf32>
    %cst_14 = arith.constant dense<0.000000e+00> : vector<8xf32>
    %18 = vector.multi_reduction <add>, %17, %cst_14 [1] : vector<8x32xf32> to vector<8xf32>
    %19 = vector.shape_cast %18 : vector<8xf32> to vector<8x1xf32>
    %c0_15 = arith.constant 0 : index
    %c0_16 = arith.constant 0 : index
    %20 = vector.load %arg7[%c0_15, %c0_16] : memref<1x1xf32, #tpu.memory_space<vmem>>, vector<1x1xf32>
    %21 = vector.broadcast %20 : vector<1x1xf32> to vector<8x1xf32>
    %22 = arith.addf %19, %21 : vector<8x1xf32>
    %23 = tpu.transpose %22, [1, 0] : vector<8x1xf32> -> vector<1x8xf32>
    %c0_17 = arith.constant 0 : index
    %c0_18 = arith.constant 0 : index
    %c0_19 = arith.constant 0 : index
    %24 = vector.load %arg8[%c0_17, %c0_18, %c0_19] : memref<1x1x8xf32, #tpu.memory_space<vmem>>, vector<1x1x8xf32>
    %25 = vector.shape_cast %24 : vector<1x1x8xf32> to vector<1x8xf32>
    %26 = vector.shape_cast %23 : vector<1x8xf32> to vector<1x1x8xf32>
    tpu.vector_store %arg8[%c0_17, %c0_18, %c0_19], %26 {strides = array<i32>} : memref<1x1x8xf32, #tpu.memory_space<vmem>>, vector<1x1x8xf32>,
    return
  }
  func.func @transform_0(%arg0: i32) -> (i32, i32) {
    %c0_i32 = arith.constant 0 : i32
    %c0_i32_0 = arith.constant 0 : i32
    return %arg0, %c0_i32 : i32, i32
  }
  func.func @transform_1(%arg0: i32) -> (i32, i32) {
    %c0_i32 = arith.constant 0 : i32
    %c0_i32_0 = arith.constant 0 : i32
    %c0_i32_1 = arith.constant 0 : i32
    return %c0_i32, %c0_i32_0 : i32, i32
  }
  func.func @transform_2(%arg0: i32) -> (i32, i32) {
    %c0_i32 = arith.constant 0 : i32
    %c0_i32_0 = arith.constant 0 : i32
    %c0_i32_1 = arith.constant 0 : i32
    return %c0_i32, %c0_i32_0 : i32, i32
  }
  func.func @transform_3(%arg0: i32) -> (i32, i32) {
    %c0_i32 = arith.constant 0 : i32
    %c0_i32_0 = arith.constant 0 : i32
    %c0_i32_1 = arith.constant 0 : i32
    return %c0_i32, %c0_i32_0 : i32, i32
  }
  func.func @transform_4(%arg0: i32) -> (i32, i32) {
    %c0_i32 = arith.constant 0 : i32
    %c0_i32_0 = arith.constant 0 : i32
    %c0_i32_1 = arith.constant 0 : i32
    return %c0_i32, %c0_i32_0 : i32, i32
  }
  func.func @transform_5(%arg0: i32) -> (i32, i32) {
    %c0_i32 = arith.constant 0 : i32
    %c0_i32_0 = arith.constant 0 : i32
    %c0_i32_1 = arith.constant 0 : i32
    return %c0_i32, %c0_i32_0 : i32, i32
  }
  func.func @transform_6(%arg0: i32) -> (i32, i32) {
    %c0_i32 = arith.constant 0 : i32
    %c0_i32_0 = arith.constant 0 : i32
    %c0_i32_1 = arith.constant 0 : i32
    return %c0_i32, %c0_i32_0 : i32, i32
  }
  func.func @transform_7(%arg0: i32) -> (i32, i32, i32) {
    %c0_i32 = arith.constant 0 : i32
    %c0_i32_0 = arith.constant 0 : i32
    %c0_i32_1 = arith.constant 0 : i32
    return %arg0, %c0_i32, %c0_i32_0 : i32, i32, i32
  }
}

module attributes {stable_mosaic.version = 11 : i64} {
  func.func @value_net_kernel(%arg0: i32, %arg1: memref<8x16xf32, #tpu.memory_space<vmem>>, %arg2: memref<16x32xf32, #tpu.memory_space<vmem>>, %arg3: memref<1x32xf32, #tpu.memory_space<vmem>>, %arg4: memref<32x32xf32, #tpu.memory_space<vmem>>, %arg5: memref<1x32xf32, #tpu.memory_space<vmem>>, %arg6: memref<1x32xf32, #tpu.memory_space<vmem>>, %arg7: memref<1x1xf32, #tpu.memory_space<vmem>>, %arg8: memref<1x1x8xf32, #tpu.memory_space<vmem>>) attributes {dimension_semantics = [#tpu.dimension_semantics<parallel>], iteration_bounds = array<i64: 1>, scalar_prefetch = 0 : i64, scratch_operands = 0 : i64, tpu.core_type = #tpu.core_type<tc>, window_params = [{transform_indices = @transform_0, window_bounds = array<i64: 8, 16>}, {pipeline_mode = #tpu.pipeline_mode<synchronous>, transform_indices = @transform_1, window_bounds = array<i64: 16, 32>}, {pipeline_mode = #tpu.pipeline_mode<synchronous>, transform_indices = @transform_2, window_bounds = array<i64: 1, 32>}, {pipeline_mode = #tpu.pipeline_mode<synchronous>, transform_indices = @transform_3, window_bounds = array<i64: 32, 32>}, {pipeline_mode = #tpu.pipeline_mode<synchronous>, transform_indices = @transform_4, window_bounds = array<i64: 1, 32>}, {pipeline_mode = #tpu.pipeline_mode<synchronous>, transform_indices = @transform_5, window_bounds = array<i64: 1, 32>}, {pipeline_mode = #tpu.pipeline_mode<synchronous>, transform_indices = @transform_6, window_bounds = array<i64: 1, 1>}, {transform_indices = @transform_7, window_bounds = array<i64: 1, 1, 8>}]} {
    %c0 = arith.constant 0 : index
    %c0_0 = arith.constant 0 : index
    %0 = vector.load %arg1[%c0, %c0_0] : memref<8x16xf32, #tpu.memory_space<vmem>>, vector<8x16xf32>
    %c0_1 = arith.constant 0 : index
    %c0_2 = arith.constant 0 : index
    %1 = vector.load %arg2[%c0_1, %c0_2] : memref<16x32xf32, #tpu.memory_space<vmem>>, vector<16x32xf32>
    %cst = arith.constant dense<0.000000e+00> : vector<8x32xf32>
    %2 = tpu.matmul %0, %1, %cst {dimension_numbers = #tpu.dot_dimension_numbers<[1], [0], [0], [1], [0, 0, 1, 1], [], []>} : vector<8x16xf32>, vector<16x32xf32>, vector<8x32xf32> -> vector<8x32xf32>
    %c0_3 = arith.constant 0 : index
    %c0_4 = arith.constant 0 : index
    %3 = vector.load %arg3[%c0_3, %c0_4] : memref<1x32xf32, #tpu.memory_space<vmem>>, vector<1x32xf32>
    %4 = vector.broadcast %3 : vector<1x32xf32> to vector<8x32xf32>
    %5 = arith.addf %2, %4 : vector<8x32xf32>
    %cst_5 = arith.constant 0.000000e+00 : f32
    %6 = vector.broadcast %cst_5 : f32 to vector<8x32xf32>
    %7 = arith.maximumf %5, %6 : vector<8x32xf32>
    %c0_6 = arith.constant 0 : index
    %c0_7 = arith.constant 0 : index
    %8 = vector.load %arg4[%c0_6, %c0_7] : memref<32x32xf32, #tpu.memory_space<vmem>>, vector<32x32xf32>
    %cst_8 = arith.constant dense<0.000000e+00> : vector<8x32xf32>
    %9 = tpu.matmul %7, %8, %cst_8 {dimension_numbers = #tpu.dot_dimension_numbers<[1], [0], [0], [1], [0, 0, 1, 1], [], []>} : vector<8x32xf32>, vector<32x32xf32>, vector<8x32xf32> -> vector<8x32xf32>
    %c0_9 = arith.constant 0 : index
    %c0_10 = arith.constant 0 : index
    %10 = vector.load %arg5[%c0_9, %c0_10] : memref<1x32xf32, #tpu.memory_space<vmem>>, vector<1x32xf32>
    %11 = vector.broadcast %10 : vector<1x32xf32> to vector<8x32xf32>
    %12 = arith.addf %9, %11 : vector<8x32xf32>
    %cst_11 = arith.constant 0.000000e+00 : f32
    %13 = vector.broadcast %cst_11 : f32 to vector<8x32xf32>
    %14 = arith.maximumf %12, %13 : vector<8x32xf32>
    %c0_12 = arith.constant 0 : index
    %c0_13 = arith.constant 0 : index
    %15 = vector.load %arg6[%c0_12, %c0_13] : memref<1x32xf32, #tpu.memory_space<vmem>>, vector<1x32xf32>
    %16 = vector.broadcast %15 : vector<1x32xf32> to vector<8x32xf32>
    %17 = arith.mulf %14, %16 : vector<8x32xf32>
    %cst_14 = arith.constant dense<0.000000e+00> : vector<8xf32>
    %18 = vector.multi_reduction <add>, %17, %cst_14 [1] : vector<8x32xf32> to vector<8xf32>
    %19 = vector.shape_cast %18 : vector<8xf32> to vector<8x1xf32>
    %c0_15 = arith.constant 0 : index
    %c0_16 = arith.constant 0 : index
    %20 = vector.load %arg7[%c0_15, %c0_16] : memref<1x1xf32, #tpu.memory_space<vmem>>, vector<1x1xf32>
    %21 = vector.broadcast %20 : vector<1x1xf32> to vector<8x1xf32>
    %22 = arith.addf %19, %21 : vector<8x1xf32>
    %23 = tpu.transpose %22, [1, 0] : vector<8x1xf32> -> vector<1x8xf32>
    %c0_17 = arith.constant 0 : index
    %c0_18 = arith.constant 0 : index
    %c0_19 = arith.constant 0 : index
    %24 = vector.load %arg8[%c0_17, %c0_18, %c0_19] : memref<1x1x8xf32, #tpu.memory_space<vmem>>, vector<1x1x8xf32>
    %25 = vector.shape_cast %24 : vector<1x1x8xf32> to vector<1x8xf32>
    %26 = vector.shape_cast %23 : vector<1x8xf32> to vector<1x1x8xf32>
    tpu.vector_store %arg8[%c0_17, %c0_18, %c0_19], %26 {strides = array<i32>} : memref<1x1x8xf32, #tpu.memory_space<vmem>>, vector<1x1x8xf32>,
    return
  }
  func.func @transform_0(%arg0: i32) -> (i32, i32) {
    %c0_i32 = arith.constant 0 : i32
    %c0_i32_0 = arith.constant 0 : i32
    return %arg0, %c0_i32 : i32, i32
  }
  func.func @transform_1(%arg0: i32) -> (i32, i32) {
    %c0_i32 = arith.constant 0 : i32
    %c0_i32_0 = arith.constant 0 : i32
    %c0_i32_1 = arith.constant 0 : i32
    return %c0_i32, %c0_i32_0 : i32, i32
  }
  func.func @transform_2(%arg0: i32) -> (i32, i32) {
    %c0_i32 = arith.constant 0 : i32
    %c0_i32_0 = arith.constant 0 : i32
    %c0_i32_1 = arith.constant 0 : i32
    return %c0_i32, %c0_i32_0 : i32, i32
  }
  func.func @transform_3(%arg0: i32) -> (i32, i32) {
    %c0_i32 = arith.constant 0 : i32
    %c0_i32_0 = arith.constant 0 : i32
    %c0_i32_1 = arith.constant 0 : i32
    return %c0_i32, %c0_i32_0 : i32, i32
  }
  func.func @transform_4(%arg0: i32) -> (i32, i32) {
    %c0_i32 = arith.constant 0 : i32
    %c0_i32_0 = arith.constant 0 : i32
    %c0_i32_1 = arith.constant 0 : i32
    return %c0_i32, %c0_i32_0 : i32, i32
  }
  func.func @transform_5(%arg0: i32) -> (i32, i32) {
    %c0_i32 = arith.constant 0 : i32
    %c0_i32_0 = arith.constant 0 : i32
    %c0_i32_1 = arith.constant 0 : i32
    return %c0_i32, %c0_i32_0 : i32, i32
  }
  func.func @transform_6(%arg0: i32) -> (i32, i32) {
    %c0_i32 = arith.constant 0 : i32
    %c0_i32_0 = arith.constant 0 : i32
    %c0_i32_1 = arith.constant 0 : i32
    return %c0_i32, %c0_i32_0 : i32, i32
  }
  func.func @transform_7(%arg0: i32) -> (i32, i32, i32) {
    %c0_i32 = arith.constant 0 : i32
    %c0_i32_0 = arith.constant 0 : i32
    %c0_i32_1 = arith.constant 0 : i32
    return %arg0, %c0_i32, %c0_i32_0 : i32, i32, i32
  }
}

module attributes {stable_mosaic.version = 11 : i64} {
  func.func @value_net_kernel(%arg0: i32, %arg1: memref<8x16xf32, #tpu.memory_space<vmem>>, %arg2: memref<16x32xf32, #tpu.memory_space<vmem>>, %arg3: memref<1x32xf32, #tpu.memory_space<vmem>>, %arg4: memref<32x32xf32, #tpu.memory_space<vmem>>, %arg5: memref<1x32xf32, #tpu.memory_space<vmem>>, %arg6: memref<1x32xf32, #tpu.memory_space<vmem>>, %arg7: memref<1x1xf32, #tpu.memory_space<vmem>>, %arg8: memref<8x1xf32, #tpu.memory_space<vmem>>) attributes {dimension_semantics = [#tpu.dimension_semantics<parallel>], iteration_bounds = array<i64: 1>, scalar_prefetch = 0 : i64, scratch_operands = 0 : i64, tpu.core_type = #tpu.core_type<tc>, window_params = [{transform_indices = @transform_0, window_bounds = array<i64: 8, 16>}, {pipeline_mode = #tpu.pipeline_mode<synchronous>, transform_indices = @transform_1, window_bounds = array<i64: 16, 32>}, {pipeline_mode = #tpu.pipeline_mode<synchronous>, transform_indices = @transform_2, window_bounds = array<i64: 1, 32>}, {pipeline_mode = #tpu.pipeline_mode<synchronous>, transform_indices = @transform_3, window_bounds = array<i64: 32, 32>}, {pipeline_mode = #tpu.pipeline_mode<synchronous>, transform_indices = @transform_4, window_bounds = array<i64: 1, 32>}, {pipeline_mode = #tpu.pipeline_mode<synchronous>, transform_indices = @transform_5, window_bounds = array<i64: 1, 32>}, {pipeline_mode = #tpu.pipeline_mode<synchronous>, transform_indices = @transform_6, window_bounds = array<i64: 1, 1>}, {transform_indices = @transform_7, window_bounds = array<i64: 8, 1>}]} {
    %c0 = arith.constant 0 : index
    %c0_0 = arith.constant 0 : index
    %0 = vector.load %arg1[%c0, %c0_0] : memref<8x16xf32, #tpu.memory_space<vmem>>, vector<8x16xf32>
    %c0_1 = arith.constant 0 : index
    %c0_2 = arith.constant 0 : index
    %1 = vector.load %arg2[%c0_1, %c0_2] : memref<16x32xf32, #tpu.memory_space<vmem>>, vector<16x32xf32>
    %cst = arith.constant dense<0.000000e+00> : vector<8x32xf32>
    %2 = tpu.matmul %0, %1, %cst {dimension_numbers = #tpu.dot_dimension_numbers<[1], [0], [0], [1], [0, 0, 1, 1], [], []>} : vector<8x16xf32>, vector<16x32xf32>, vector<8x32xf32> -> vector<8x32xf32>
    %c0_3 = arith.constant 0 : index
    %c0_4 = arith.constant 0 : index
    %3 = vector.load %arg3[%c0_3, %c0_4] : memref<1x32xf32, #tpu.memory_space<vmem>>, vector<1x32xf32>
    %4 = vector.broadcast %3 : vector<1x32xf32> to vector<8x32xf32>
    %5 = arith.addf %2, %4 : vector<8x32xf32>
    %cst_5 = arith.constant 0.000000e+00 : f32
    %6 = vector.broadcast %cst_5 : f32 to vector<8x32xf32>
    %7 = arith.maximumf %5, %6 : vector<8x32xf32>
    %c0_6 = arith.constant 0 : index
    %c0_7 = arith.constant 0 : index
    %8 = vector.load %arg4[%c0_6, %c0_7] : memref<32x32xf32, #tpu.memory_space<vmem>>, vector<32x32xf32>
    %cst_8 = arith.constant dense<0.000000e+00> : vector<8x32xf32>
    %9 = tpu.matmul %7, %8, %cst_8 {dimension_numbers = #tpu.dot_dimension_numbers<[1], [0], [0], [1], [0, 0, 1, 1], [], []>} : vector<8x32xf32>, vector<32x32xf32>, vector<8x32xf32> -> vector<8x32xf32>
    %c0_9 = arith.constant 0 : index
    %c0_10 = arith.constant 0 : index
    %10 = vector.load %arg5[%c0_9, %c0_10] : memref<1x32xf32, #tpu.memory_space<vmem>>, vector<1x32xf32>
    %11 = vector.broadcast %10 : vector<1x32xf32> to vector<8x32xf32>
    %12 = arith.addf %9, %11 : vector<8x32xf32>
    %cst_11 = arith.constant 0.000000e+00 : f32
    %13 = vector.broadcast %cst_11 : f32 to vector<8x32xf32>
    %14 = arith.maximumf %12, %13 : vector<8x32xf32>
    %c0_12 = arith.constant 0 : index
    %c0_13 = arith.constant 0 : index
    %15 = vector.load %arg6[%c0_12, %c0_13] : memref<1x32xf32, #tpu.memory_space<vmem>>, vector<1x32xf32>
    %16 = vector.broadcast %15 : vector<1x32xf32> to vector<8x32xf32>
    %17 = arith.mulf %14, %16 : vector<8x32xf32>
    %cst_14 = arith.constant dense<0.000000e+00> : vector<8xf32>
    %18 = vector.multi_reduction <add>, %17, %cst_14 [1] : vector<8x32xf32> to vector<8xf32>
    %19 = vector.shape_cast %18 : vector<8xf32> to vector<8x1xf32>
    %c0_15 = arith.constant 0 : index
    %c0_16 = arith.constant 0 : index
    %20 = vector.load %arg7[%c0_15, %c0_16] : memref<1x1xf32, #tpu.memory_space<vmem>>, vector<1x1xf32>
    %21 = vector.broadcast %20 : vector<1x1xf32> to vector<8x1xf32>
    %22 = arith.addf %19, %21 : vector<8x1xf32>
    %c0_17 = arith.constant 0 : index
    %c0_18 = arith.constant 0 : index
    %23 = vector.load %arg8[%c0_17, %c0_18] : memref<8x1xf32, #tpu.memory_space<vmem>>, vector<8x1xf32>
    tpu.vector_store %arg8[%c0_17, %c0_18], %22 {strides = array<i32>} : memref<8x1xf32, #tpu.memory_space<vmem>>, vector<8x1xf32>,
    return
  }
  func.func @transform_0(%arg0: i32) -> (i32, i32) {
    %c0_i32 = arith.constant 0 : i32
    %c0_i32_0 = arith.constant 0 : i32
    return %arg0, %c0_i32 : i32, i32
  }
  func.func @transform_1(%arg0: i32) -> (i32, i32) {
    %c0_i32 = arith.constant 0 : i32
    %c0_i32_0 = arith.constant 0 : i32
    %c0_i32_1 = arith.constant 0 : i32
    return %c0_i32, %c0_i32_0 : i32, i32
  }
  func.func @transform_2(%arg0: i32) -> (i32, i32) {
    %c0_i32 = arith.constant 0 : i32
    %c0_i32_0 = arith.constant 0 : i32
    %c0_i32_1 = arith.constant 0 : i32
    return %c0_i32, %c0_i32_0 : i32, i32
  }
  func.func @transform_3(%arg0: i32) -> (i32, i32) {
    %c0_i32 = arith.constant 0 : i32
    %c0_i32_0 = arith.constant 0 : i32
    %c0_i32_1 = arith.constant 0 : i32
    return %c0_i32, %c0_i32_0 : i32, i32
  }
  func.func @transform_4(%arg0: i32) -> (i32, i32) {
    %c0_i32 = arith.constant 0 : i32
    %c0_i32_0 = arith.constant 0 : i32
    %c0_i32_1 = arith.constant 0 : i32
    return %c0_i32, %c0_i32_0 : i32, i32
  }
  func.func @transform_5(%arg0: i32) -> (i32, i32) {
    %c0_i32 = arith.constant 0 : i32
    %c0_i32_0 = arith.constant 0 : i32
    %c0_i32_1 = arith.constant 0 : i32
    return %c0_i32, %c0_i32_0 : i32, i32
  }
  func.func @transform_6(%arg0: i32) -> (i32, i32) {
    %c0_i32 = arith.constant 0 : i32
    %c0_i32_0 = arith.constant 0 : i32
    %c0_i32_1 = arith.constant 0 : i32
    return %c0_i32, %c0_i32_0 : i32, i32
  }
  func.func @transform_7(%arg0: i32) -> (i32, i32) {
    %c0_i32 = arith.constant 0 : i32
    %c0_i32_0 = arith.constant 0 : i32
    return %arg0, %c0_i32 : i32, i32
  }
}

module attributes {stable_mosaic.version = 11 : i64} {
  func.func @value_net_kernel(%arg0: i32, %arg1: memref<8x16xf32, #tpu.memory_space<vmem>>, %arg2: memref<16x32xf32, #tpu.memory_space<vmem>>, %arg3: memref<1x32xf32, #tpu.memory_space<vmem>>, %arg4: memref<32x32xf32, #tpu.memory_space<vmem>>, %arg5: memref<1x32xf32, #tpu.memory_space<vmem>>, %arg6: memref<1x32xf32, #tpu.memory_space<vmem>>, %arg7: memref<1x1xf32, #tpu.memory_space<vmem>>, %arg8: memref<8x1xf32, #tpu.memory_space<vmem>>) attributes {dimension_semantics = [#tpu.dimension_semantics<parallel>], iteration_bounds = array<i64: 1>, scalar_prefetch = 0 : i64, scratch_operands = 0 : i64, tpu.core_type = #tpu.core_type<tc>, window_params = [{transform_indices = @transform_0, window_bounds = array<i64: 8, 16>}, {pipeline_mode = #tpu.pipeline_mode<synchronous>, transform_indices = @transform_1, window_bounds = array<i64: 16, 32>}, {pipeline_mode = #tpu.pipeline_mode<synchronous>, transform_indices = @transform_2, window_bounds = array<i64: 1, 32>}, {pipeline_mode = #tpu.pipeline_mode<synchronous>, transform_indices = @transform_3, window_bounds = array<i64: 32, 32>}, {pipeline_mode = #tpu.pipeline_mode<synchronous>, transform_indices = @transform_4, window_bounds = array<i64: 1, 32>}, {pipeline_mode = #tpu.pipeline_mode<synchronous>, transform_indices = @transform_5, window_bounds = array<i64: 1, 32>}, {pipeline_mode = #tpu.pipeline_mode<synchronous>, transform_indices = @transform_6, window_bounds = array<i64: 1, 1>}, {transform_indices = @transform_7, window_bounds = array<i64: 8, 1>}]} {
    %c0 = arith.constant 0 : index
    %c0_0 = arith.constant 0 : index
    %0 = vector.load %arg1[%c0, %c0_0] : memref<8x16xf32, #tpu.memory_space<vmem>>, vector<8x16xf32>
    %c0_1 = arith.constant 0 : index
    %c0_2 = arith.constant 0 : index
    %1 = vector.load %arg2[%c0_1, %c0_2] : memref<16x32xf32, #tpu.memory_space<vmem>>, vector<16x32xf32>
    %cst = arith.constant dense<0.000000e+00> : vector<8x32xf32>
    %2 = tpu.matmul %0, %1, %cst {dimension_numbers = #tpu.dot_dimension_numbers<[1], [0], [0], [1], [0, 0, 1, 1], [], []>} : vector<8x16xf32>, vector<16x32xf32>, vector<8x32xf32> -> vector<8x32xf32>
    %c0_3 = arith.constant 0 : index
    %c0_4 = arith.constant 0 : index
    %3 = vector.load %arg3[%c0_3, %c0_4] : memref<1x32xf32, #tpu.memory_space<vmem>>, vector<1x32xf32>
    %4 = vector.broadcast %3 : vector<1x32xf32> to vector<8x32xf32>
    %5 = arith.addf %2, %4 : vector<8x32xf32>
    %cst_5 = arith.constant 0.000000e+00 : f32
    %6 = vector.broadcast %cst_5 : f32 to vector<8x32xf32>
    %7 = arith.maximumf %5, %6 : vector<8x32xf32>
    %c0_6 = arith.constant 0 : index
    %c0_7 = arith.constant 0 : index
    %8 = vector.load %arg4[%c0_6, %c0_7] : memref<32x32xf32, #tpu.memory_space<vmem>>, vector<32x32xf32>
    %cst_8 = arith.constant dense<0.000000e+00> : vector<8x32xf32>
    %9 = tpu.matmul %7, %8, %cst_8 {dimension_numbers = #tpu.dot_dimension_numbers<[1], [0], [0], [1], [0, 0, 1, 1], [], []>} : vector<8x32xf32>, vector<32x32xf32>, vector<8x32xf32> -> vector<8x32xf32>
    %c0_9 = arith.constant 0 : index
    %c0_10 = arith.constant 0 : index
    %10 = vector.load %arg5[%c0_9, %c0_10] : memref<1x32xf32, #tpu.memory_space<vmem>>, vector<1x32xf32>
    %11 = vector.broadcast %10 : vector<1x32xf32> to vector<8x32xf32>
    %12 = arith.addf %9, %11 : vector<8x32xf32>
    %cst_11 = arith.constant 0.000000e+00 : f32
    %13 = vector.broadcast %cst_11 : f32 to vector<8x32xf32>
    %14 = arith.maximumf %12, %13 : vector<8x32xf32>
    %c0_12 = arith.constant 0 : index
    %c0_13 = arith.constant 0 : index
    %15 = vector.load %arg6[%c0_12, %c0_13] : memref<1x32xf32, #tpu.memory_space<vmem>>, vector<1x32xf32>
    %16 = vector.broadcast %15 : vector<1x32xf32> to vector<8x32xf32>
    %17 = arith.mulf %14, %16 : vector<8x32xf32>
    %cst_14 = arith.constant dense<0.000000e+00> : vector<8xf32>
    %18 = vector.multi_reduction <add>, %17, %cst_14 [1] : vector<8x32xf32> to vector<8xf32>
    %19 = vector.shape_cast %18 : vector<8xf32> to vector<8x1xf32>
    %c0_15 = arith.constant 0 : index
    %c0_16 = arith.constant 0 : index
    %20 = vector.load %arg7[%c0_15, %c0_16] : memref<1x1xf32, #tpu.memory_space<vmem>>, vector<1x1xf32>
    %21 = vector.broadcast %20 : vector<1x1xf32> to vector<8x1xf32>
    %22 = arith.addf %19, %21 : vector<8x1xf32>
    %c0_17 = arith.constant 0 : index
    %c0_18 = arith.constant 0 : index
    %23 = vector.load %arg8[%c0_17, %c0_18] : memref<8x1xf32, #tpu.memory_space<vmem>>, vector<8x1xf32>
    tpu.vector_store %arg8[%c0_17, %c0_18], %22 {strides = array<i32>} : memref<8x1xf32, #tpu.memory_space<vmem>>, vector<8x1xf32>,
    return
  }
  func.func @transform_0(%arg0: i32) -> (i32, i32) {
    %c0_i32 = arith.constant 0 : i32
    %c0_i32_0 = arith.constant 0 : i32
    return %arg0, %c0_i32 : i32, i32
  }
  func.func @transform_1(%arg0: i32) -> (i32, i32) {
    %c0_i32 = arith.constant 0 : i32
    %c0_i32_0 = arith.constant 0 : i32
    %c0_i32_1 = arith.constant 0 : i32
    return %c0_i32, %c0_i32_0 : i32, i32
  }
  func.func @transform_2(%arg0: i32) -> (i32, i32) {
    %c0_i32 = arith.constant 0 : i32
    %c0_i32_0 = arith.constant 0 : i32
    %c0_i32_1 = arith.constant 0 : i32
    return %c0_i32, %c0_i32_0 : i32, i32
  }
  func.func @transform_3(%arg0: i32) -> (i32, i32) {
    %c0_i32 = arith.constant 0 : i32
    %c0_i32_0 = arith.constant 0 : i32
    %c0_i32_1 = arith.constant 0 : i32
    return %c0_i32, %c0_i32_0 : i32, i32
  }
  func.func @transform_4(%arg0: i32) -> (i32, i32) {
    %c0_i32 = arith.constant 0 : i32
    %c0_i32_0 = arith.constant 0 : i32
    %c0_i32_1 = arith.constant 0 : i32
    return %c0_i32, %c0_i32_0 : i32, i32
  }
  func.func @transform_5(%arg0: i32) -> (i32, i32) {
    %c0_i32 = arith.constant 0 : i32
    %c0_i32_0 = arith.constant 0 : i32
    %c0_i32_1 = arith.constant 0 : i32
    return %c0_i32, %c0_i32_0 : i32, i32
  }
  func.func @transform_6(%arg0: i32) -> (i32, i32) {
    %c0_i32 = arith.constant 0 : i32
    %c0_i32_0 = arith.constant 0 : i32
    %c0_i32_1 = arith.constant 0 : i32
    return %c0_i32, %c0_i32_0 : i32, i32
  }
  func.func @transform_7(%arg0: i32) -> (i32, i32) {
    %c0_i32 = arith.constant 0 : i32
    %c0_i32_0 = arith.constant 0 : i32
    return %arg0, %c0_i32 : i32, i32
  }
}

</mosaic_0001>

<bundles_post_ra>
// kernel: tpu_custom_call.1
= control target key start
LH: loop header
LB: loop body
LE: loop exit
PB: predicated region body
PF: predicated region fallthrough
CT: control target
= control target key end

     0   :  { %s389_s0 = inlined_call_operand.hbm [shape: f32[8,16], index: 0, kind: input, shape index: {}]   ;;  %s390_s1 = inlined_call_operand.hbm [shape: f32[16,32], index: 1, kind: input, shape index: {}]   ;;  %s391_s2 = inlined_call_operand.vmem [shape: f32[1,32], index: 2, kind: input, shape index: {}]   ;;  %s392_s3 = inlined_call_operand.hbm [shape: f32[32,32], index: 3, kind: input, shape index: {}]   ;;  %s393_s4 = inlined_call_operand.vmem [shape: f32[1,32], index: 4, kind: input, shape index: {}]   ;;  %s394_s5 = inlined_call_operand.vmem [shape: f32[1,32], index: 5, kind: input, shape index: {}]   ;;  %s395_s6 = inlined_call_operand.<no memory space> [shape: f32[1,1], index: 6, kind: input, shape index: {}]   ;;  %s396_s7 = inlined_call_operand.hbm [shape: f32[1,1,8], index: 7, kind: output, shape index: {}]  }
   0x1   :  { %v12_v0 = vstv %s395_s6 }
   0x2   :  { %13 = vst [vmem:[#allocation2] sm:$0x1] %v12_v0 }
   0x3   :  { %14 = vsyncpa [#allocation4], 0 }
   0x4   :  { %15 = vsyncpa [#allocation7], 0  ;;  %s32_s28 = sshll.u32 %s390_s1, 4  ;;  %s33_s28 = int_to_ptr.hbm [resolvable:$true] %s32_s28 }
   0x5   :  { %16 = vsyncpa [#allocation5], 0  ;;  %s319_s29 = smov [#allocation6]   ;;  %s22_s10 = sshll.u32 %s389_s0, 4  ;;  %s23_s10 = int_to_ptr.hbm [resolvable:$true] %s22_s10 }
   0x6   :  { %s34_s30 = sshll.u32 %s319_s29, 4  ;;  %s320_s11 = smov 128   ;;  %s35_s30 = int_to_ptr.vmem [resolvable:$true] %s34_s30 }
   0x7   :  { %s321_s12 = smov 8   ;;  %s322_s6 = smov [#allocation3]  }
   0x8   :  { %40 = dma.hbm_to_vmem [thread:$0]  %s33_s28, 256, %s35_s30, [#allocation7], %s320_s11, %s320_s11, %s321_s12  }
   0x9   :  { %s24_s13 = sshll.u32 %s322_s6, 4  ;;  %s47_s16 = sshll.u32 %s392_s3, 4  ;;  %s25_s13 = int_to_ptr.vmem [resolvable:$true] %s24_s13  ;;  %s48_s16 = int_to_ptr.hbm [resolvable:$true] %s47_s16 }
   0xa   :  { %27 = dma.hbm_to_vmem [thread:$0]  %s23_s10, 128, %s25_s13, [#allocation4]  }
   0xb   :  { %s323_s1 = smov [#allocation8]  }
   0xc   :  { %s49_s17 = sshll.u32 %s323_s1, 4  ;;  %s50_s17 = int_to_ptr.vmem [resolvable:$true] %s49_s17 }
   0xd   :  { %55 = dma.hbm_to_vmem [thread:$0]  %s48_s16, 512, %s50_s17, [#allocation7], %s320_s11, %s320_s11, %s321_s12  }
   0xe   :  { %313 = dma.done.wait [#allocation4], 128  }
   0xf   :  { %314 = vsyncadd [#allocation4], 4294967168 }
  0x10   :  { %315 = dma.done.wait [#allocation7], 768  }
  0x11   :  { %316 = vsyncadd [#allocation7], 4294966528  ;;  %v76_v1 = vld [vmem:[#allocation6 + $0x8] sm:$0xff]  ;;  %v75_v2 = vld [vmem:[#allocation6] sm:$0xff]  ;;  %vm81_vm0 = vcmask 130048   ;;  %vm114_vm1 = vcmask 261120  }
  0x12   :  { %99 = vmatpush.msra.mxu0 %v76_v1  ;;  %v74_v3 = vld [vmem:[#allocation3] sm:$0xff]  ;;  %v109_v4 = vld [vmem:[#allocation8 + $0x18] sm:$0xff]  ;;  %v108_v5 = vld [vmem:[#allocation8 + $0x10] sm:$0xff]  ;;  %vm184_vm2 = vcmask 57344  }
  0x13   :  { %130 = vmatpush.msra.mxu1 %v109_v4  ;;  %v107_v6 = vld [vmem:[#allocation8 + $0x8] sm:$0xff]  ;;  %v106_v7 = vld [vmem:[#allocation8] sm:$0xff] }
  0x14   :  { %100 = vmatpush.msra.mxu0 %v75_v2  ;;  %v213_v8 = vld [vmem:[%s391_s2] ss:$0 sm:$0xff]  ;;  %s324_s2 = smov [#allocation9]  }
  0x15   :  { %204 = vmatmul.msk.f32.vlgmr.msra.gmra.mxu0 %vm81_vm0, %v74_v3  ;;  %131 = vmatpush.msra.mxu1 %v108_v5  ;;  %v214_v12 = vld [vmem:[%s393_s4] ss:$0 sm:$0xff]  ;;  %s191_s22 = sshll.u32 %s324_s2, 4  ;;  %s193_s4 = sshll.u32 %s396_s7, 4  ;;  %s192_s22 = int_to_ptr.vmem [resolvable:$true] %s191_s22  ;;  %s194_s4 = int_to_ptr.hbm [resolvable:$true] %s193_s4 }
  0x16   :  { %v215_v15 = vld [vmem:[%s394_s5] ss:$0 sm:$0xff] }
  0x17   :  { %132 = vmatpush.msra.mxu1 %v107_v6  ;;  %v216_v19 = vld [vmem:[#allocation2] ss:$0 sm:$0xff] }
  0x19   :  { %133 = vmatpush.msra.mxu1 %v106_v7 }
  0x92   :  { %v102_v9 = vpop.f32.mrf.mxu0 }
  0x93   :  { %v103_v10 = vadd.f32 %v213_v8, %v102_v9 }
  0x95   :  { %v105_v11 = vmax.f32 %v103_v10, 0.0 }
  0x97   :  { %205 = vmatmul.msk.f32.vlgmr.msra.gmra.mxu1 %vm114_vm1, %v105_v11 }
 0x114   :  { %v135_v13 = vpop.f32.mrf.mxu1 }
 0x115   :  { %v136_v14 = vadd.f32 %v214_v12, %v135_v13 }
 0x117   :  { %v138_v16 = vmax.f32 %v136_v14, 0.0 }
 0x119   :  { %v143_v17 = vmul.f32 %v215_v15, %v138_v16 }
 0x11b   :  { %v144_v18 = vsel %vm114_vm1, %v143_v17, 0.0 }
 0x11c   :  { %145 = vadd.xlane.f32.xlu0 %v144_v18 }
 0x18f   :  { %v146_v20 = vpop.xlane.xlu0 %145 }
 0x190   :  { %v151_v21 = vadd.f32 %v216_v19, %v146_v20 }
 0x192   :  { %152 = vxpose.xlu0.b32.start.end [1/1] (short) (narrow) %v151_v21, 8 }
 0x236   :  { %v168_v22 = vpop.trf.xlu0 }
 0x237   :  { %185 = vst.msk [vmem:[#allocation9] sm:$0x1] %vm184_vm2, %v168_v22 }
 0x238   :  { %196 = dma.vmem_to_hbm [thread:$0]  %s192_s22, 16, %s194_s4, [#allocation5]  }
 0x239   :  { %317 = dma.done.wait [#allocation5], 16  }
 0x23a   :  { %318 = vsyncadd [#allocation5], 4294967280 }
 0x23b   :  { %201 = vsyncpa [#allocation4], 1 }
 0x23c   :  { %202 = vsyncpa [#allocation7], 1 }
 0x23d   :  { %203 = vsyncpa [#allocation5], 1 }

// kernel: tpu_custom_call.1
= control target key start
LH: loop header
LB: loop body
LE: loop exit
PB: predicated region body
PF: predicated region fallthrough
CT: control target
= control target key end

     0   :  { %s389_s0 = inlined_call_operand.hbm [shape: f32[8,16], index: 0, kind: input, shape index: {}]   ;;  %s390_s1 = inlined_call_operand.hbm [shape: f32[16,32], index: 1, kind: input, shape index: {}]   ;;  %s391_s2 = inlined_call_operand.vmem [shape: f32[1,32], index: 2, kind: input, shape index: {}]   ;;  %s392_s3 = inlined_call_operand.hbm [shape: f32[32,32], index: 3, kind: input, shape index: {}]   ;;  %s393_s4 = inlined_call_operand.vmem [shape: f32[1,32], index: 4, kind: input, shape index: {}]   ;;  %s394_s5 = inlined_call_operand.vmem [shape: f32[1,32], index: 5, kind: input, shape index: {}]   ;;  %s395_s6 = inlined_call_operand.<no memory space> [shape: f32[1,1], index: 6, kind: input, shape index: {}]   ;;  %s396_s7 = inlined_call_operand.hbm [shape: f32[1,1,8], index: 7, kind: output, shape index: {}]  }
   0x1   :  { %v12_v0 = vstv %s395_s6 }
   0x2   :  { %13 = vst [vmem:[#allocation2] sm:$0x1] %v12_v0 }
   0x3   :  { %14 = vsyncpa [#allocation4], 0 }
   0x4   :  { %15 = vsyncpa [#allocation7], 0  ;;  %s32_s28 = sshll.u32 %s390_s1, 4  ;;  %s33_s28 = int_to_ptr.hbm [resolvable:$true] %s32_s28 }
   0x5   :  { %16 = vsyncpa [#allocation5], 0  ;;  %s319_s29 = smov [#allocation6]   ;;  %s22_s10 = sshll.u32 %s389_s0, 4  ;;  %s23_s10 = int_to_ptr.hbm [resolvable:$true] %s22_s10 }
   0x6   :  { %s34_s30 = sshll.u32 %s319_s29, 4  ;;  %s320_s11 = smov 128   ;;  %s35_s30 = int_to_ptr.vmem [resolvable:$true] %s34_s30 }
   0x7   :  { %s321_s12 = smov 8   ;;  %s322_s6 = smov [#allocation3]  }
   0x8   :  { %40 = dma.hbm_to_vmem [thread:$0]  %s33_s28, 256, %s35_s30, [#allocation7], %s320_s11, %s320_s11, %s321_s12  }
   0x9   :  { %s24_s13 = sshll.u32 %s322_s6, 4  ;;  %s47_s16 = sshll.u32 %s392_s3, 4  ;;  %s25_s13 = int_to_ptr.vmem [resolvable:$true] %s24_s13  ;;  %s48_s16 = int_to_ptr.hbm [resolvable:$true] %s47_s16 }
   0xa   :  { %27 = dma.hbm_to_vmem [thread:$0]  %s23_s10, 128, %s25_s13, [#allocation4]  }
   0xb   :  { %s323_s1 = smov [#allocation8]  }
   0xc   :  { %s49_s17 = sshll.u32 %s323_s1, 4  ;;  %s50_s17 = int_to_ptr.vmem [resolvable:$true] %s49_s17 }
   0xd   :  { %55 = dma.hbm_to_vmem [thread:$0]  %s48_s16, 512, %s50_s17, [#allocation7], %s320_s11, %s320_s11, %s321_s12  }
   0xe   :  { %313 = dma.done.wait [#allocation4], 128  }
   0xf   :  { %314 = vsyncadd [#allocation4], 4294967168 }
  0x10   :  { %315 = dma.done.wait [#allocation7], 768  }
  0x11   :  { %316 = vsyncadd [#allocation7], 4294966528  ;;  %v76_v1 = vld [vmem:[#allocation6 + $0x8] sm:$0xff]  ;;  %v75_v2 = vld [vmem:[#allocation6] sm:$0xff]  ;;  %vm81_vm0 = vcmask 130048   ;;  %vm114_vm1 = vcmask 261120  }
  0x12   :  { %99 = vmatpush.msra.mxu0 %v76_v1  ;;  %v74_v3 = vld [vmem:[#allocation3] sm:$0xff]  ;;  %v109_v4 = vld [vmem:[#allocation8 + $0x18] sm:$0xff]  ;;  %v108_v5 = vld [vmem:[#allocation8 + $0x10] sm:$0xff]  ;;  %vm184_vm2 = vcmask 57344  }
  0x13   :  { %130 = vmatpush.msra.mxu1 %v109_v4  ;;  %v107_v6 = vld [vmem:[#allocation8 + $0x8] sm:$0xff]  ;;  %v106_v7 = vld [vmem:[#allocation8] sm:$0xff] }
  0x14   :  { %100 = vmatpush.msra.mxu0 %v75_v2  ;;  %v213_v8 = vld [vmem:[%s391_s2] ss:$0 sm:$0xff]  ;;  %s324_s2 = smov [#allocation9]  }
  0x15   :  { %204 = vmatmul.msk.f32.vlgmr.msra.gmra.mxu0 %vm81_vm0, %v74_v3  ;;  %131 = vmatpush.msra.mxu1 %v108_v5  ;;  %v214_v12 = vld [vmem:[%s393_s4] ss:$0 sm:$0xff]  ;;  %s191_s22 = sshll.u32 %s324_s2, 4  ;;  %s193_s4 = sshll.u32 %s396_s7, 4  ;;  %s192_s22 = int_to_ptr.vmem [resolvable:$true] %s191_s22  ;;  %s194_s4 = int_to_ptr.hbm [resolvable:$true] %s193_s4 }
  0x16   :  { %v215_v15 = vld [vmem:[%s394_s5] ss:$0 sm:$0xff] }
  0x17   :  { %132 = vmatpush.msra.mxu1 %v107_v6  ;;  %v216_v19 = vld [vmem:[#allocation2] ss:$0 sm:$0xff] }
  0x19   :  { %133 = vmatpush.msra.mxu1 %v106_v7 }
  0x92   :  { %v102_v9 = vpop.f32.mrf.mxu0 }
  0x93   :  { %v103_v10 = vadd.f32 %v213_v8, %v102_v9 }
  0x95   :  { %v105_v11 = vmax.f32 %v103_v10, 0.0 }
  0x97   :  { %205 = vmatmul.msk.f32.vlgmr.msra.gmra.mxu1 %vm114_vm1, %v105_v11 }
 0x114   :  { %v135_v13 = vpop.f32.mrf.mxu1 }
 0x115   :  { %v136_v14 = vadd.f32 %v214_v12, %v135_v13 }
 0x117   :  { %v138_v16 = vmax.f32 %v136_v14, 0.0 }
 0x119   :  { %v143_v17 = vmul.f32 %v215_v15, %v138_v16 }
 0x11b   :  { %v144_v18 = vsel %vm114_vm1, %v143_v17, 0.0 }
 0x11c   :  { %145 = vadd.xlane.f32.xlu0 %v144_v18 }
 0x18f   :  { %v146_v20 = vpop.xlane.xlu0 %145 }
 0x190   :  { %v151_v21 = vadd.f32 %v216_v19, %v146_v20 }
 0x192   :  { %152 = vxpose.xlu0.b32.start.end [1/1] (short) (narrow) %v151_v21, 8 }
 0x236   :  { %v168_v22 = vpop.trf.xlu0 }
 0x237   :  { %185 = vst.msk [vmem:[#allocation9] sm:$0x1] %vm184_vm2, %v168_v22 }
 0x238   :  { %196 = dma.vmem_to_hbm [thread:$0]  %s192_s22, 16, %s194_s4, [#allocation5]  }
 0x239   :  { %317 = dma.done.wait [#allocation5], 16  }
 0x23a   :  { %318 = vsyncadd [#allocation5], 4294967280 }
 0x23b   :  { %201 = vsyncpa [#allocation4], 1 }
 0x23c   :  { %202 = vsyncpa [#allocation7], 1 }
 0x23d   :  { %203 = vsyncpa [#allocation5], 1 }

// kernel: tpu_custom_call.1
= control target key start
LH: loop header
LB: loop body
LE: loop exit
PB: predicated region body
PF: predicated region fallthrough
CT: control target
= control target key end

     0   :  { %s315_s0 = inlined_call_operand.hbm [shape: f32[8,16], index: 0, kind: input, shape index: {}]   ;;  %s316_s1 = inlined_call_operand.hbm [shape: f32[16,32], index: 1, kind: input, shape index: {}]   ;;  %s317_s2 = inlined_call_operand.vmem [shape: f32[1,32], index: 2, kind: input, shape index: {}]   ;;  %s318_s3 = inlined_call_operand.hbm [shape: f32[32,32], index: 3, kind: input, shape index: {}]   ;;  %s319_s4 = inlined_call_operand.vmem [shape: f32[1,32], index: 4, kind: input, shape index: {}]   ;;  %s320_s5 = inlined_call_operand.vmem [shape: f32[1,32], index: 5, kind: input, shape index: {}]   ;;  %s321_s6 = inlined_call_operand.<no memory space> [shape: f32[1,1], index: 6, kind: input, shape index: {}]   ;;  %s322_s7 = inlined_call_operand.vmem [shape: f32[8,1], index: 7, kind: output, shape index: {}]  }
   0x1   :  { %v12_v0 = vstv %s321_s6 }
   0x2   :  { %13 = vst [vmem:[#allocation2] sm:$0x1] %v12_v0 }
   0x3   :  { %14 = vsyncpa [#allocation4], 0 }
   0x4   :  { %15 = vsyncpa [#allocation6], 0  ;;  %s31_s28 = sshll.u32 %s316_s1, 4  ;;  %s246_s29 = smov [#allocation5]   ;;  %s32_s28 = int_to_ptr.hbm [resolvable:$true] %s31_s28 }
   0x5   :  { %s33_s30 = sshll.u32 %s246_s29, 4  ;;  %s21_s10 = sshll.u32 %s315_s0, 4  ;;  %s34_s30 = int_to_ptr.vmem [resolvable:$true] %s33_s30  ;;  %s22_s10 = int_to_ptr.hbm [resolvable:$true] %s21_s10 }
   0x6   :  { %s247_s11 = smov 128   ;;  %s248_s12 = smov 8  }
   0x7   :  { %39 = dma.hbm_to_vmem [thread:$0]  %s32_s28, 256, %s34_s30, [#allocation6], %s247_s11, %s247_s11, %s248_s12  }
   0x8   :  { %s249_s6 = smov [#allocation3]   ;;  %s46_s16 = sshll.u32 %s318_s3, 4  ;;  %s47_s16 = int_to_ptr.hbm [resolvable:$true] %s46_s16 }
   0x9   :  { %s23_s13 = sshll.u32 %s249_s6, 4  ;;  %s250_s1 = smov [#allocation7]   ;;  %s24_s13 = int_to_ptr.vmem [resolvable:$true] %s23_s13 }
   0xa   :  { %26 = dma.hbm_to_vmem [thread:$0]  %s22_s10, 128, %s24_s13, [#allocation4]  }
   0xb   :  { %s48_s17 = sshll.u32 %s250_s1, 4  ;;  %s49_s17 = int_to_ptr.vmem [resolvable:$true] %s48_s17 }
   0xc   :  { %54 = dma.hbm_to_vmem [thread:$0]  %s47_s16, 512, %s49_s17, [#allocation6], %s247_s11, %s247_s11, %s248_s12  }
   0xd   :  { %242 = dma.done.wait [#allocation4], 128  }
   0xe   :  { %243 = vsyncadd [#allocation4], 4294967168 }
   0xf   :  { %244 = dma.done.wait [#allocation6], 768  }
  0x10   :  { %245 = vsyncadd [#allocation6], 4294966528  ;;  %v75_v1 = vld [vmem:[#allocation5 + $0x8] sm:$0xff]  ;;  %v74_v2 = vld [vmem:[#allocation5] sm:$0xff]  ;;  %vm80_vm0 = vcmask 130048   ;;  %vm113_vm1 = vcmask 261120  }
  0x11   :  { %98 = vmatpush.msra.mxu0 %v75_v1  ;;  %v73_v3 = vld [vmem:[#allocation3] sm:$0xff]  ;;  %v108_v4 = vld [vmem:[#allocation7 + $0x18] sm:$0xff]  ;;  %v107_v5 = vld [vmem:[#allocation7 + $0x10] sm:$0xff]  ;;  %vm151_vm2 = vcmask 7168  }
  0x12   :  { %129 = vmatpush.msra.mxu1 %v108_v4  ;;  %v106_v6 = vld [vmem:[#allocation7 + $0x8] sm:$0xff]  ;;  %v105_v7 = vld [vmem:[#allocation7] sm:$0xff] }
  0x13   :  { %99 = vmatpush.msra.mxu0 %v74_v2  ;;  %v166_v8 = vld [vmem:[%s317_s2] ss:$0 sm:$0xff] }
  0x14   :  { %159 = vmatmul.msk.f32.vlgmr.msra.gmra.mxu0 %vm80_vm0, %v73_v3  ;;  %130 = vmatpush.msra.mxu1 %v107_v5  ;;  %v167_v12 = vld [vmem:[%s319_s4] ss:$0 sm:$0xff] }
  0x15   :  { %v168_v15 = vld [vmem:[%s320_s5] ss:$0 sm:$0xff] }
  0x16   :  { %131 = vmatpush.msra.mxu1 %v106_v6  ;;  %v169_v19 = vld [vmem:[#allocation2] ss:$0 sm:$0xff] }
  0x18   :  { %132 = vmatpush.msra.mxu1 %v105_v7 }
  0x91   :  { %v101_v9 = vpop.f32.mrf.mxu0 }
  0x92   :  { %v102_v10 = vadd.f32 %v166_v8, %v101_v9 }
  0x94   :  { %v104_v11 = vmax.f32 %v102_v10, 0.0 }
  0x96   :  { %160 = vmatmul.msk.f32.vlgmr.msra.gmra.mxu1 %vm113_vm1, %v104_v11 }
 0x113   :  { %v134_v13 = vpop.f32.mrf.mxu1 }
 0x114   :  { %v135_v14 = vadd.f32 %v167_v12, %v134_v13 }
 0x116   :  { %v137_v16 = vmax.f32 %v135_v14, 0.0 }
 0x118   :  { %v142_v17 = vmul.f32 %v168_v15, %v137_v16 }
 0x11a   :  { %v143_v18 = vsel %vm113_vm1, %v142_v17, 0.0 }
 0x11b   :  { %144 = vadd.xlane.f32.xlu0 %v143_v18 }
 0x18e   :  { %v145_v20 = vpop.xlane.xlu0 %144 }
 0x18f   :  { %v150_v21 = vadd.f32 %v169_v19, %v145_v20 }
 0x191   :  { %152 = vst.msk [vmem:[%s322_s7] sm:$0xff] %vm151_vm2, %v150_v21 }
 0x192   :  { %157 = vsyncpa [#allocation4], 1 }
 0x193   :  { %158 = vsyncpa [#allocation6], 1 }

// kernel: tpu_custom_call.1
= control target key start
LH: loop header
LB: loop body
LE: loop exit
PB: predicated region body
PF: predicated region fallthrough
CT: control target
= control target key end

     0   :  { %s315_s0 = inlined_call_operand.hbm [shape: f32[8,16], index: 0, kind: input, shape index: {}]   ;;  %s316_s1 = inlined_call_operand.hbm [shape: f32[16,32], index: 1, kind: input, shape index: {}]   ;;  %s317_s2 = inlined_call_operand.vmem [shape: f32[1,32], index: 2, kind: input, shape index: {}]   ;;  %s318_s3 = inlined_call_operand.hbm [shape: f32[32,32], index: 3, kind: input, shape index: {}]   ;;  %s319_s4 = inlined_call_operand.vmem [shape: f32[1,32], index: 4, kind: input, shape index: {}]   ;;  %s320_s5 = inlined_call_operand.vmem [shape: f32[1,32], index: 5, kind: input, shape index: {}]   ;;  %s321_s6 = inlined_call_operand.<no memory space> [shape: f32[1,1], index: 6, kind: input, shape index: {}]   ;;  %s322_s7 = inlined_call_operand.vmem [shape: f32[8,1], index: 7, kind: output, shape index: {}]  }
   0x1   :  { %v12_v0 = vstv %s321_s6 }
   0x2   :  { %13 = vst [vmem:[#allocation2] sm:$0x1] %v12_v0 }
   0x3   :  { %14 = vsyncpa [#allocation4], 0 }
   0x4   :  { %15 = vsyncpa [#allocation6], 0  ;;  %s31_s28 = sshll.u32 %s316_s1, 4  ;;  %s246_s29 = smov [#allocation5]   ;;  %s32_s28 = int_to_ptr.hbm [resolvable:$true] %s31_s28 }
   0x5   :  { %s33_s30 = sshll.u32 %s246_s29, 4  ;;  %s21_s10 = sshll.u32 %s315_s0, 4  ;;  %s34_s30 = int_to_ptr.vmem [resolvable:$true] %s33_s30  ;;  %s22_s10 = int_to_ptr.hbm [resolvable:$true] %s21_s10 }
   0x6   :  { %s247_s11 = smov 128   ;;  %s248_s12 = smov 8  }
   0x7   :  { %39 = dma.hbm_to_vmem [thread:$0]  %s32_s28, 256, %s34_s30, [#allocation6], %s247_s11, %s247_s11, %s248_s12  }
   0x8   :  { %s249_s6 = smov [#allocation3]   ;;  %s46_s16 = sshll.u32 %s318_s3, 4  ;;  %s47_s16 = int_to_ptr.hbm [resolvable:$true] %s46_s16 }
   0x9   :  { %s23_s13 = sshll.u32 %s249_s6, 4  ;;  %s250_s1 = smov [#allocation7]   ;;  %s24_s13 = int_to_ptr.vmem [resolvable:$true] %s23_s13 }
   0xa   :  { %26 = dma.hbm_to_vmem [thread:$0]  %s22_s10, 128, %s24_s13, [#allocation4]  }
   0xb   :  { %s48_s17 = sshll.u32 %s250_s1, 4  ;;  %s49_s17 = int_to_ptr.vmem [resolvable:$true] %s48_s17 }
   0xc   :  { %54 = dma.hbm_to_vmem [thread:$0]  %s47_s16, 512, %s49_s17, [#allocation6], %s247_s11, %s247_s11, %s248_s12  }
   0xd   :  { %242 = dma.done.wait [#allocation4], 128  }
   0xe   :  { %243 = vsyncadd [#allocation4], 4294967168 }
   0xf   :  { %244 = dma.done.wait [#allocation6], 768  }
  0x10   :  { %245 = vsyncadd [#allocation6], 4294966528  ;;  %v75_v1 = vld [vmem:[#allocation5 + $0x8] sm:$0xff]  ;;  %v74_v2 = vld [vmem:[#allocation5] sm:$0xff]  ;;  %vm80_vm0 = vcmask 130048   ;;  %vm113_vm1 = vcmask 261120  }
  0x11   :  { %98 = vmatpush.msra.mxu0 %v75_v1  ;;  %v73_v3 = vld [vmem:[#allocation3] sm:$0xff]  ;;  %v108_v4 = vld [vmem:[#allocation7 + $0x18] sm:$0xff]  ;;  %v107_v5 = vld [vmem:[#allocation7 + $0x10] sm:$0xff]  ;;  %vm151_vm2 = vcmask 7168  }
  0x12   :  { %129 = vmatpush.msra.mxu1 %v108_v4  ;;  %v106_v6 = vld [vmem:[#allocation7 + $0x8] sm:$0xff]  ;;  %v105_v7 = vld [vmem:[#allocation7] sm:$0xff] }
  0x13   :  { %99 = vmatpush.msra.mxu0 %v74_v2  ;;  %v166_v8 = vld [vmem:[%s317_s2] ss:$0 sm:$0xff] }
  0x14   :  { %159 = vmatmul.msk.f32.vlgmr.msra.gmra.mxu0 %vm80_vm0, %v73_v3  ;;  %130 = vmatpush.msra.mxu1 %v107_v5  ;;  %v167_v12 = vld [vmem:[%s319_s4] ss:$0 sm:$0xff] }
  0x15   :  { %v168_v15 = vld [vmem:[%s320_s5] ss:$0 sm:$0xff] }
  0x16   :  { %131 = vmatpush.msra.mxu1 %v106_v6  ;;  %v169_v19 = vld [vmem:[#allocation2] ss:$0 sm:$0xff] }
  0x18   :  { %132 = vmatpush.msra.mxu1 %v105_v7 }
  0x91   :  { %v101_v9 = vpop.f32.mrf.mxu0 }
  0x92   :  { %v102_v10 = vadd.f32 %v166_v8, %v101_v9 }
  0x94   :  { %v104_v11 = vmax.f32 %v102_v10, 0.0 }
  0x96   :  { %160 = vmatmul.msk.f32.vlgmr.msra.gmra.mxu1 %vm113_vm1, %v104_v11 }
 0x113   :  { %v134_v13 = vpop.f32.mrf.mxu1 }
 0x114   :  { %v135_v14 = vadd.f32 %v167_v12, %v134_v13 }
 0x116   :  { %v137_v16 = vmax.f32 %v135_v14, 0.0 }
 0x118   :  { %v142_v17 = vmul.f32 %v168_v15, %v137_v16 }
 0x11a   :  { %v143_v18 = vsel %vm113_vm1, %v142_v17, 0.0 }
 0x11b   :  { %144 = vadd.xlane.f32.xlu0 %v143_v18 }
 0x18e   :  { %v145_v20 = vpop.xlane.xlu0 %144 }
 0x18f   :  { %v150_v21 = vadd.f32 %v169_v19, %v145_v20 }
 0x191   :  { %152 = vst.msk [vmem:[%s322_s7] sm:$0xff] %vm151_vm2, %v150_v21 }
 0x192   :  { %157 = vsyncpa [#allocation4], 1 }
 0x193   :  { %158 = vsyncpa [#allocation6], 1 }

</bundles_post_ra>
